<compile_context>
chip_gen: v7x
topology: tpu7x:2x2x1
jax: 0.10.0
libtpu: 0.0.40
codegen_flags: <defaults>
</compile_context>

<pallas_src>
import math
from functools import partial

import jax
import jax.numpy as jnp
from jax import lax
from jax.experimental import pallas as pl
from jax.experimental.pallas import tpu as pltpu


# ----------------------------- config -----------------------------------------
class Config:
    d_model = 32
    n_heads = 4
    seq_len = 8        # max_distance for bucketing AND the sequence length we run
    n_buckets = 32
    is_causal = True
    qkv_bias = True


# --------------------- relative position bias (glue, plain JAX) ----------------
def _relative_position_bucket(relative_position, is_causal=True, num_buckets=32,
                              max_distance=128):
    # Faithful port of the torch staticmethod.
    ret = jnp.zeros_like(relative_position)
    n = -relative_position
    if not is_causal:
        num_buckets //= 2
        ret = ret + (n < 0).astype(jnp.int32) * num_buckets
        n = jnp.abs(n)
    else:
        n = jnp.maximum(n, jnp.zeros_like(n))
    max_exact = num_buckets // 2
    is_small = n < max_exact
    n_safe = jnp.maximum(n, 1)  # avoid log(0); only used where is_small is False
    val_if_large = max_exact + (
        jnp.log(n_safe.astype(jnp.float32) / max_exact)
        / math.log(max_distance / max_exact)
        * (num_buckets - max_exact)
    ).astype(jnp.int32)
    val_if_large = jnp.minimum(val_if_large,
                               jnp.full_like(val_if_large, num_buckets - 1))
    ret = ret + jnp.where(is_small, n, val_if_large)
    return ret


def relative_position_bias(emb_weight, qlen, klen, cfg):
    # emb_weight: (n_buckets, n_heads)
    context_position = jnp.arange(qlen, dtype=jnp.int32)[:, None]
    memory_position = jnp.arange(klen, dtype=jnp.int32)[None, :]
    relative_position = memory_position - context_position        # (q, k)
    rp_bucket = _relative_position_bucket(
        relative_position, is_causal=cfg.is_causal,
        num_buckets=cfg.n_buckets, max_distance=cfg.seq_len)
    values = emb_weight[rp_bucket]                                 # (q, k, H)
    values = jnp.transpose(values, (2, 0, 1))                      # (H, q, k)
    return values


# ------------------------------ Pallas kernel ----------------------------------
def _attn_block_kernel(x_ref, vecs_ref, wqkv_ref, bqkv_ref, wo_ref, mask_ref, o_ref,
                       *, n_batch, n_heads, d_head, seq_len, d_model, scale):
    x = x_ref[...]                                 # (n_batch*L, D)  residual input
    ln_w = vecs_ref[0]                             # (D,)
    ln_b = vecs_ref[1]                             # (D,)
    bo = vecs_ref[2]                               # (D,)  output-projection bias

    # LayerNorm (eps = 1e-5, torch default) over all rows at once.
    mu = jnp.mean(x, axis=-1, keepdims=True)
    var = jnp.mean((x - mu) * (x - mu), axis=-1, keepdims=True)
    xn = (x - mu) * jax.lax.rsqrt(var + 1e-5) * ln_w + ln_b

    # Fused Q/K/V projection: one (rows, D) x (D, 3D) MXU pass.
    qkv = jnp.dot(xn, wqkv_ref[...], preferred_element_type=jnp.float32) + bqkv_ref[0]

    # Per-batch, per-head scaled-dot-product attention with relative-position bias.
    # Per-head contexts are lane-concatenated back into (L, D) tiles; all batches are
    # stacked into one (n_batch*L, D) slab so the output projection is ONE matmul and
    # the residual/bias add + store happen once on the full slab.
    ctx_rows = []
    for b in range(n_batch):
        r0 = b * seq_len
        qb = qkv[r0:r0 + seq_len, 0:d_model]                       # (L, D)
        kb = qkv[r0:r0 + seq_len, d_model:2 * d_model]             # (L, D)
        vb = qkv[r0:r0 + seq_len, 2 * d_model:3 * d_model]         # (L, D)
        head_ctx = []
        for h in range(n_heads):
            lo = h * d_head
            qh = qb[:, lo:lo + d_head]                             # (L, dh)
            kh = kb[:, lo:lo + d_head]
            vh = vb[:, lo:lo + d_head]
            # Contract over dh without materializing kh.T (no XLU transpose).
            s = lax.dot_general(qh, kh, (((1,), (1,)), ((), ())),
                                preferred_element_type=jnp.float32) * scale
            s = s + mask_ref[h]                                    # (L, L) bias + causal
            s = s - jnp.max(s, axis=-1, keepdims=True)
            p = jnp.exp(s)
            # EUP reciprocal instead of VALU divide.
            p = p * pl.reciprocal(jnp.sum(p, axis=-1, keepdims=True), approx=True)
            head_ctx.append(jnp.dot(p, vh, preferred_element_type=jnp.float32))  # (L, dh)
        ctx_rows.append(jnp.concatenate(head_ctx, axis=-1))        # (L, D)
    ctx_all = jnp.concatenate(ctx_rows, axis=0)                    # (n_batch*L, D)

    # Single output-projection matmul across all batches, then one full-slab store.
    proj = jnp.dot(ctx_all, wo_ref[...], preferred_element_type=jnp.float32)
    o_ref[...] = x + proj + bo


def only_attention_block(x, params, attn_mask, cfg, *, batch_blocks=1):
    """x: (B, L, D) float32.  attn_mask: (H, L, L) float32 (bias + causal mask).

    batch_blocks=1 collapses the batch grid (best at this size on every generation:
    each grid step costs ~0.35us and re-stages the resident weight tiles).  Only raise
    it once each grid step would see >= ~256-512 rows of work.
    """
    B, L, D = x.shape
    H = cfg.n_heads
    dh = D // H
    scale = dh ** (-0.5)
    assert B % batch_blocks == 0
    bpg = B // batch_blocks                       # batches per grid step

    # Fuse projection weights/biases in the wrapper (free, done once under jit).
    wqkv = jnp.concatenate([params["wq"], params["wk"], params["wv"]], axis=1)  # (D, 3D)
    bqkv = jnp.concatenate([params["bq"], params["bk"], params["bv"]], axis=1)  # (1, 3D)
    vecs = jnp.concatenate([params["ln_w"], params["ln_b"], params["bo"]], axis=0)  # (3, D)

    x2 = x.reshape(B * L, D)                      # lane-dense row slab

    kernel = partial(_attn_block_kernel, n_batch=bpg, n_heads=H, d_head=dh,
                     seq_len=L, d_model=D, scale=scale)

    out2 = pl.pallas_call(
        kernel,
        out_shape=jax.ShapeDtypeStruct((B * L, D), jnp.float32),
        grid_spec=pltpu.PrefetchScalarGridSpec(
            num_scalar_prefetch=0,
            grid=(batch_blocks,),
            in_specs=[
                pl.BlockSpec((bpg * L, D), lambda g: (g, 0)),      # x rows
                pl.BlockSpec((3, D), lambda g: (0, 0)),            # ln_w / ln_b / bo
                pl.BlockSpec((D, 3 * D), lambda g: (0, 0)),        # fused Wqkv
                pl.BlockSpec((1, 3 * D), lambda g: (0, 0)),        # fused qkv bias
                pl.BlockSpec((D, D), lambda g: (0, 0)),            # Wo
                pl.BlockSpec((H, L, L), lambda g: (0, 0, 0)),      # attn bias + mask
            ],
            out_specs=pl.BlockSpec((bpg * L, D), lambda g: (g, 0)),
        ),
        compiler_params=pltpu.CompilerParams(
            dimension_semantics=("parallel",)),
    )(x2, vecs, wqkv, bqkv, params["wo"], attn_mask)
    return out2.reshape(B, L, D)


# ------------------------------ reference (plain JAX) ---------------------------
def reference_block(x, params, attn_mask, cfg):
    B, L, D = x.shape
    H = cfg.n_heads
    dh = D // H
    scale = dh ** (-0.5)
    mu = jnp.mean(x, axis=-1, keepdims=True)
    var = jnp.mean((x - mu) ** 2, axis=-1, keepdims=True)
    xn = (x - mu) / jnp.sqrt(var + 1e-5) * params["ln_w"][0] + params["ln_b"][0]
    q = xn @ params["wq"] + params["bq"][0]
    k = xn @ params["wk"] + params["bk"][0]
    v = xn @ params["wv"] + params["bv"][0]
    q = q.reshape(B, L, H, dh).transpose(0, 2, 1, 3)
    k = k.reshape(B, L, H, dh).transpose(0, 2, 1, 3)
    v = v.reshape(B, L, H, dh).transpose(0, 2, 1, 3)
    s = jnp.einsum("bhqd,bhkd->bhqk", q, k) * scale + attn_mask[None]
    p = jax.nn.softmax(s, axis=-1)
    o = jnp.einsum("bhqk,bhkd->bhqd", p, v)
    o = o.transpose(0, 2, 1, 3).reshape(B, L, D)
    o = o @ params["wo"] + params["bo"][0]
    return x + o


# ------------------------------ main --------------------------------------------
if __name__ == "__main__":
    cfg = Config()
    B, L, D, H = 2, cfg.seq_len, cfg.d_model, cfg.n_heads

    key = jax.random.PRNGKey(0)
    keys = jax.random.split(key, 12)

    # Deterministic parameter init (synthetic, no checkpoint).
    def lin_w(k):   # pre-transposed: (D_in, D_out)
        return jax.random.normal(k, (D, D), jnp.float32) * 0.05

    params = {
        "ln_w": jnp.ones((1, D), jnp.float32),
        "ln_b": jnp.zeros((1, D), jnp.float32),
        "wq": lin_w(keys[0]), "bq": jax.random.normal(keys[1], (1, D), jnp.float32) * 0.01,
        "wk": lin_w(keys[2]), "bk": jax.random.normal(keys[3], (1, D), jnp.float32) * 0.01,
        "wv": lin_w(keys[4]), "bv": jax.random.normal(keys[5], (1, D), jnp.float32) * 0.01,
        "wo": lin_w(keys[6]), "bo": jax.random.normal(keys[7], (1, D), jnp.float32) * 0.01,
    }
    emb_weight = jax.random.normal(keys[8], (cfg.n_buckets, H), jnp.float32) * 0.02

    # Relative position bias + causal mask folded into one additive (H, L, L) tensor.
    bias = relative_position_bias(emb_weight, L, L, cfg)            # (H, L, L)
    if cfg.is_causal:
        tril = jnp.tril(jnp.ones((L, L), dtype=bool))
        # torch uses float('-inf'); use a large negative finite value for TPU safety.
        bias = jnp.where(tril[None, :, :], bias, jnp.float32(-1e30))
    attn_mask = bias.astype(jnp.float32)

    x = jax.random.normal(keys[9], (B, L, D), jnp.float32)

    out = only_attention_block(x, params, attn_mask, cfg, batch_blocks=1)
    out = jax.block_until_ready(out)

    ref = reference_block(x, params, attn_mask, cfg)
    assert out.shape == (B, L, D)
    assert jnp.allclose(out, ref, atol=1e-2, rtol=1e-2), "mismatch vs JAX reference"

    print("KERNEL_OK")
</pallas_src>

<mosaic_0001>
module attributes {stable_mosaic.version = 11 : i64} {
  func.func @_attn_block_kernel(%arg0: i32, %arg1: memref<16x32xf32, #tpu.memory_space<vmem>>, %arg2: memref<3x32xf32, #tpu.memory_space<vmem>>, %arg3: memref<32x96xf32, #tpu.memory_space<vmem>>, %arg4: memref<1x96xf32, #tpu.memory_space<vmem>>, %arg5: memref<32x32xf32, #tpu.memory_space<vmem>>, %arg6: memref<4x8x8xf32, #tpu.memory_space<vmem>>, %arg7: memref<16x32xf32, #tpu.memory_space<vmem>>) attributes {dimension_semantics = [#tpu.dimension_semantics<parallel>], iteration_bounds = array<i64: 1>, scalar_prefetch = 0 : i64, scratch_operands = 0 : i64, tpu.core_type = #tpu.core_type<tc>, window_params = [{transform_indices = @transform_0, window_bounds = array<i64: 16, 32>}, {pipeline_mode = #tpu.pipeline_mode<synchronous>, transform_indices = @transform_1, window_bounds = array<i64: 3, 32>}, {pipeline_mode = #tpu.pipeline_mode<synchronous>, transform_indices = @transform_2, window_bounds = array<i64: 32, 96>}, {pipeline_mode = #tpu.pipeline_mode<synchronous>, transform_indices = @transform_3, window_bounds = array<i64: 1, 96>}, {pipeline_mode = #tpu.pipeline_mode<synchronous>, transform_indices = @transform_4, window_bounds = array<i64: 32, 32>}, {pipeline_mode = #tpu.pipeline_mode<synchronous>, transform_indices = @transform_5, window_bounds = array<i64: 4, 8, 8>}, {transform_indices = @transform_6, window_bounds = array<i64: 16, 32>}]} {
    %c0 = arith.constant 0 : index
    %c0_0 = arith.constant 0 : index
    %0 = vector.load %arg1[%c0, %c0_0] : memref<16x32xf32, #tpu.memory_space<vmem>>, vector<16x32xf32>
    %c0_1 = arith.constant 0 : index
    %c0_2 = arith.constant 0 : index
    %1 = vector.load %arg2[%c0_1, %c0_2] : memref<3x32xf32, #tpu.memory_space<vmem>>, vector<1x32xf32>
    %2 = vector.shape_cast %1 : vector<1x32xf32> to vector<32xf32>
    %c1 = arith.constant 1 : index
    %c0_3 = arith.constant 0 : index
    %3 = vector.load %arg2[%c1, %c0_3] : memref<3x32xf32, #tpu.memory_space<vmem>>, vector<1x32xf32>
    %4 = vector.shape_cast %3 : vector<1x32xf32> to vector<32xf32>
    %c2 = arith.constant 2 : index
    %c0_4 = arith.constant 0 : index
    %5 = vector.load %arg2[%c2, %c0_4] : memref<3x32xf32, #tpu.memory_space<vmem>>, vector<1x32xf32>
    %6 = vector.shape_cast %5 : vector<1x32xf32> to vector<32xf32>
    %cst = arith.constant dense<0.000000e+00> : vector<16xf32>
    %7 = vector.multi_reduction <add>, %0, %cst [1] : vector<16x32xf32> to vector<16xf32>
    %8 = vector.shape_cast %7 : vector<16xf32> to vector<16x1xf32>
    %cst_5 = arith.constant 3.200000e+01 : f32
    %9 = vector.broadcast %cst_5 : f32 to vector<16x1xf32>
    %10 = arith.divf %8, %9 : vector<16x1xf32>
    %11 = vector.broadcast %10 : vector<16x1xf32> to vector<16x32xf32>
    %12 = arith.subf %0, %11 : vector<16x32xf32>
    %13 = vector.broadcast %10 : vector<16x1xf32> to vector<16x32xf32>
    %14 = arith.subf %0, %13 : vector<16x32xf32>
    %15 = arith.mulf %12, %14 : vector<16x32xf32>
    %cst_6 = arith.constant dense<0.000000e+00> : vector<16xf32>
    %16 = vector.multi_reduction <add>, %15, %cst_6 [1] : vector<16x32xf32> to vector<16xf32>
    %17 = vector.shape_cast %16 : vector<16xf32> to vector<16x1xf32>
    %cst_7 = arith.constant 3.200000e+01 : f32
    %18 = vector.broadcast %cst_7 : f32 to vector<16x1xf32>
    %19 = arith.divf %17, %18 : vector<16x1xf32>
    %20 = vector.broadcast %10 : vector<16x1xf32> to vector<16x32xf32>
    %21 = arith.subf %0, %20 : vector<16x32xf32>
    %cst_8 = arith.constant 9.99999974E-6 : f32
    %22 = vector.broadcast %cst_8 : f32 to vector<16x1xf32>
    %23 = arith.addf %19, %22 : vector<16x1xf32>
    %24 = math.rsqrt %23 : vector<16x1xf32>
    %25 = vector.broadcast %24 : vector<16x1xf32> to vector<16x32xf32>
    %26 = arith.mulf %21, %25 : vector<16x32xf32>
    %27 = vector.shape_cast %2 : vector<32xf32> to vector<1x32xf32>
    %28 = vector.broadcast %27 : vector<1x32xf32> to vector<16x32xf32>
    %29 = arith.mulf %26, %28 : vector<16x32xf32>
    %30 = vector.shape_cast %4 : vector<32xf32> to vector<1x32xf32>
    %31 = vector.broadcast %30 : vector<1x32xf32> to vector<16x32xf32>
    %32 = arith.addf %29, %31 : vector<16x32xf32>
    %c0_9 = arith.constant 0 : index
    %c0_10 = arith.constant 0 : index
    %33 = vector.load %arg3[%c0_9, %c0_10] : memref<32x96xf32, #tpu.memory_space<vmem>>, vector<32x96xf32>
    %cst_11 = arith.constant dense<0.000000e+00> : vector<16x96xf32>
    %34 = tpu.matmul %32, %33, %cst_11 {dimension_numbers = #tpu.dot_dimension_numbers<[1], [0], [0], [1], [0, 0, 1, 1], [], []>} : vector<16x32xf32>, vector<32x96xf32>, vector<16x96xf32> -> vector<16x96xf32>
    %c0_12 = arith.constant 0 : index
    %c0_13 = arith.constant 0 : index
    %35 = vector.load %arg4[%c0_12, %c0_13] : memref<1x96xf32, #tpu.memory_space<vmem>>, vector<1x96xf32>
    %36 = vector.shape_cast %35 : vector<1x96xf32> to vector<96xf32>
    %37 = vector.shape_cast %36 : vector<96xf32> to vector<1x96xf32>
    %38 = vector.broadcast %37 : vector<1x96xf32> to vector<16x96xf32>
    %39 = arith.addf %34, %38 : vector<16x96xf32>
    %40 = vector.extract_strided_slice %39 {offsets = [0, 0], sizes = [8, 32], strides = [1, 1]} : vector<16x96xf32> to vector<8x32xf32>
    %41 = vector.extract_strided_slice %39 {offsets = [0, 32], sizes = [8, 32], strides = [1, 1]} : vector<16x96xf32> to vector<8x32xf32>
    %42 = vector.extract_strided_slice %39 {offsets = [0, 64], sizes = [8, 32], strides = [1, 1]} : vector<16x96xf32> to vector<8x32xf32>
    %43 = vector.extract_strided_slice %40 {offsets = [0, 0], sizes = [8, 8], strides = [1, 1]} : vector<8x32xf32> to vector<8x8xf32>
    %44 = vector.extract_strided_slice %41 {offsets = [0, 0], sizes = [8, 8], strides = [1, 1]} : vector<8x32xf32> to vector<8x8xf32>
    %45 = vector.extract_strided_slice %42 {offsets = [0, 0], sizes = [8, 8], strides = [1, 1]} : vector<8x32xf32> to vector<8x8xf32>
    %cst_14 = arith.constant dense<0.000000e+00> : vector<8x8xf32>
    %46 = tpu.matmul %43, %44, %cst_14 {dimension_numbers = #tpu.dot_dimension_numbers<[1], [1], [0], [0], [0, 0, 1, 0], [], []>} : vector<8x8xf32>, vector<8x8xf32>, vector<8x8xf32> -> vector<8x8xf32>
    %cst_15 = arith.constant 0.353553385 : f32
    %47 = vector.broadcast %cst_15 : f32 to vector<8x8xf32>
    %48 = arith.mulf %46, %47 : vector<8x8xf32>
    %c0_16 = arith.constant 0 : index
    %c0_17 = arith.constant 0 : index
    %c0_18 = arith.constant 0 : index
    %49 = vector.load %arg6[%c0_16, %c0_17, %c0_18] : memref<4x8x8xf32, #tpu.memory_space<vmem>>, vector<1x8x8xf32>
    %50 = vector.shape_cast %49 : vector<1x8x8xf32> to vector<8x8xf32>
    %51 = arith.addf %48, %50 : vector<8x8xf32>
    %cst_19 = arith.constant dense<0xFF800000> : vector<8xf32>
    %52 = vector.multi_reduction <maximumf>, %51, %cst_19 [1] : vector<8x8xf32> to vector<8xf32>
    %53 = vector.shape_cast %52 : vector<8xf32> to vector<8x1xf32>
    %54 = vector.broadcast %53 : vector<8x1xf32> to vector<8x8xf32>
    %55 = arith.subf %51, %54 : vector<8x8xf32>
    %56 = math.exp %55 : vector<8x8xf32>
    %cst_20 = arith.constant dense<0.000000e+00> : vector<8xf32>
    %57 = vector.multi_reduction <add>, %56, %cst_20 [1] : vector<8x8xf32> to vector<8xf32>
    %58 = vector.shape_cast %57 : vector<8xf32> to vector<8x1xf32>
    %59 = tpu.reciprocal %58 {approx = true} : vector<8x1xf32> -> vector<8x1xf32>
    %60 = vector.broadcast %59 : vector<8x1xf32> to vector<8x8xf32>
    %61 = arith.mulf %56, %60 : vector<8x8xf32>
    %cst_21 = arith.constant dense<0.000000e+00> : vector<8x8xf32>
    %62 = tpu.matmul %61, %45, %cst_21 {dimension_numbers = #tpu.dot_dimension_numbers<[1], [0], [0], [1], [0, 0, 1, 1], [], []>} : vector<8x8xf32>, vector<8x8xf32>, vector<8x8xf32> -> vector<8x8xf32>
    %63 = vector.extract_strided_slice %40 {offsets = [0, 8], sizes = [8, 8], strides = [1, 1]} : vector<8x32xf32> to vector<8x8xf32>
    %64 = vector.extract_strided_slice %41 {offsets = [0, 8], sizes = [8, 8], strides = [1, 1]} : vector<8x32xf32> to vector<8x8xf32>
    %65 = vector.extract_strided_slice %42 {offsets = [0, 8], sizes = [8, 8], strides = [1, 1]} : vector<8x32xf32> to vector<8x8xf32>
    %cst_22 = arith.constant dense<0.000000e+00> : vector<8x8xf32>
    %66 = tpu.matmul %63, %64, %cst_22 {dimension_numbers = #tpu.dot_dimension_numbers<[1], [1], [0], [0], [0, 0, 1, 0], [], []>} : vector<8x8xf32>, vector<8x8xf32>, vector<8x8xf32> -> vector<8x8xf32>
    %cst_23 = arith.constant 0.353553385 : f32
    %67 = vector.broadcast %cst_23 : f32 to vector<8x8xf32>
    %68 = arith.mulf %66, %67 : vector<8x8xf32>
    %c1_24 = arith.constant 1 : index
    %c0_25 = arith.constant 0 : index
    %c0_26 = arith.constant 0 : index
    %69 = vector.load %arg6[%c1_24, %c0_25, %c0_26] : memref<4x8x8xf32, #tpu.memory_space<vmem>>, vector<1x8x8xf32>
    %70 = vector.shape_cast %69 : vector<1x8x8xf32> to vector<8x8xf32>
    %71 = arith.addf %68, %70 : vector<8x8xf32>
    %cst_27 = arith.constant dense<0xFF800000> : vector<8xf32>
    %72 = vector.multi_reduction <maximumf>, %71, %cst_27 [1] : vector<8x8xf32> to vector<8xf32>
    %73 = vector.shape_cast %72 : vector<8xf32> to vector<8x1xf32>
    %74 = vector.broadcast %73 : vector<8x1xf32> to vector<8x8xf32>
    %75 = arith.subf %71, %74 : vector<8x8xf32>
    %76 = math.exp %75 : vector<8x8xf32>
    %cst_28 = arith.constant dense<0.000000e+00> : vector<8xf32>
    %77 = vector.multi_reduction <add>, %76, %cst_28 [1] : vector<8x8xf32> to vector<8xf32>
    %78 = vector.shape_cast %77 : vector<8xf32> to vector<8x1xf32>
    %79 = tpu.reciprocal %78 {approx = true} : vector<8x1xf32> -> vector<8x1xf32>
    %80 = vector.broadcast %79 : vector<8x1xf32> to vector<8x8xf32>
    %81 = arith.mulf %76, %80 : vector<8x8xf32>
    %cst_29 = arith.constant dense<0.000000e+00> : vector<8x8xf32>
    %82 = tpu.matmul %81, %65, %cst_29 {dimension_numbers = #tpu.dot_dimension_numbers<[1], [0], [0], [1], [0, 0, 1, 1], [], []>} : vector<8x8xf32>, vector<8x8xf32>, vector<8x8xf32> -> vector<8x8xf32>
    %83 = vector.extract_strided_slice %40 {offsets = [0, 16], sizes = [8, 8], strides = [1, 1]} : vector<8x32xf32> to vector<8x8xf32>
    %84 = vector.extract_strided_slice %41 {offsets = [0, 16], sizes = [8, 8], strides = [1, 1]} : vector<8x32xf32> to vector<8x8xf32>
    %85 = vector.extract_strided_slice %42 {offsets = [0, 16], sizes = [8, 8], strides = [1, 1]} : vector<8x32xf32> to vector<8x8xf32>
    %cst_30 = arith.constant dense<0.000000e+00> : vector<8x8xf32>
    %86 = tpu.matmul %83, %84, %cst_30 {dimension_numbers = #tpu.dot_dimension_numbers<[1], [1], [0], [0], [0, 0, 1, 0], [], []>} : vector<8x8xf32>, vector<8x8xf32>, vector<8x8xf32> -> vector<8x8xf32>
    %cst_31 = arith.constant 0.353553385 : f32
    %87 = vector.broadcast %cst_31 : f32 to vector<8x8xf32>
    %88 = arith.mulf %86, %87 : vector<8x8xf32>
    %c2_32 = arith.constant 2 : index
    %c0_33 = arith.constant 0 : index
    %c0_34 = arith.constant 0 : index
    %89 = vector.load %arg6[%c2_32, %c0_33, %c0_34] : memref<4x8x8xf32, #tpu.memory_space<vmem>>, vector<1x8x8xf32>
    %90 = vector.shape_cast %89 : vector<1x8x8xf32> to vector<8x8xf32>
    %91 = arith.addf %88, %90 : vector<8x8xf32>
    %cst_35 = arith.constant dense<0xFF800000> : vector<8xf32>
    %92 = vector.multi_reduction <maximumf>, %91, %cst_35 [1] : vector<8x8xf32> to vector<8xf32>
    %93 = vector.shape_cast %92 : vector<8xf32> to vector<8x1xf32>
    %94 = vector.broadcast %93 : vector<8x1xf32> to vector<8x8xf32>
    %95 = arith.subf %91, %94 : vector<8x8xf32>
    %96 = math.exp %95 : vector<8x8xf32>
    %cst_36 = arith.constant dense<0.000000e+00> : vector<8xf32>
    %97 = vector.multi_reduction <add>, %96, %cst_36 [1] : vector<8x8xf32> to vector<8xf32>
    %98 = vector.shape_cast %97 : vector<8xf32> to vector<8x1xf32>
    %99 = tpu.reciprocal %98 {approx = true} : vector<8x1xf32> -> vector<8x1xf32>
    %100 = vector.broadcast %99 : vector<8x1xf32> to vector<8x8xf32>
    %101 = arith.mulf %96, %100 : vector<8x8xf32>
    %cst_37 = arith.constant dense<0.000000e+00> : vector<8x8xf32>
    %102 = tpu.matmul %101, %85, %cst_37 {dimension_numbers = #tpu.dot_dimension_numbers<[1], [0], [0], [1], [0, 0, 1, 1], [], []>} : vector<8x8xf32>, vector<8x8xf32>, vector<8x8xf32> -> vector<8x8xf32>
    %103 = vector.extract_strided_slice %40 {offsets = [0, 24], sizes = [8, 8], strides = [1, 1]} : vector<8x32xf32> to vector<8x8xf32>
    %104 = vector.extract_strided_slice %41 {offsets = [0, 24], sizes = [8, 8], strides = [1, 1]} : vector<8x32xf32> to vector<8x8xf32>
    %105 = vector.extract_strided_slice %42 {offsets = [0, 24], sizes = [8, 8], strides = [1, 1]} : vector<8x32xf32> to vector<8x8xf32>
    %cst_38 = arith.constant dense<0.000000e+00> : vector<8x8xf32>
    %106 = tpu.matmul %103, %104, %cst_38 {dimension_numbers = #tpu.dot_dimension_numbers<[1], [1], [0], [0], [0, 0, 1, 0], [], []>} : vector<8x8xf32>, vector<8x8xf32>, vector<8x8xf32> -> vector<8x8xf32>
    %cst_39 = arith.constant 0.353553385 : f32
    %107 = vector.broadcast %cst_39 : f32 to vector<8x8xf32>
    %108 = arith.mulf %106, %107 : vector<8x8xf32>
    %c3 = arith.constant 3 : index
    %c0_40 = arith.constant 0 : index
    %c0_41 = arith.constant 0 : index
    %109 = vector.load %arg6[%c3, %c0_40, %c0_41] : memref<4x8x8xf32, #tpu.memory_space<vmem>>, vector<1x8x8xf32>
    %110 = vector.shape_cast %109 : vector<1x8x8xf32> to vector<8x8xf32>
    %111 = arith.addf %108, %110 : vector<8x8xf32>
    %cst_42 = arith.constant dense<0xFF800000> : vector<8xf32>
    %112 = vector.multi_reduction <maximumf>, %111, %cst_42 [1] : vector<8x8xf32> to vector<8xf32>
    %113 = vector.shape_cast %112 : vector<8xf32> to vector<8x1xf32>
    %114 = vector.broadcast %113 : vector<8x1xf32> to vector<8x8xf32>
    %115 = arith.subf %111, %114 : vector<8x8xf32>
    %116 = math.exp %115 : vector<8x8xf32>
    %cst_43 = arith.constant dense<0.000000e+00> : vector<8xf32>
    %117 = vector.multi_reduction <add>, %116, %cst_43 [1] : vector<8x8xf32> to vector<8xf32>
    %118 = vector.shape_cast %117 : vector<8xf32> to vector<8x1xf32>
    %119 = tpu.reciprocal %118 {approx = true} : vector<8x1xf32> -> vector<8x1xf32>
    %120 = vector.broadcast %119 : vector<8x1xf32> to vector<8x8xf32>
    %121 = arith.mulf %116, %120 : vector<8x8xf32>
    %cst_44 = arith.constant dense<0.000000e+00> : vector<8x8xf32>
    %122 = tpu.matmul %121, %105, %cst_44 {dimension_numbers = #tpu.dot_dimension_numbers<[1], [0], [0], [1], [0, 0, 1, 1], [], []>} : vector<8x8xf32>, vector<8x8xf32>, vector<8x8xf32> -> vector<8x8xf32>
    %123 = tpu.concatenate %62, %82, %102, %122 in 1 : vector<8x8xf32>, vector<8x8xf32>, vector<8x8xf32>, vector<8x8xf32> -> vector<8x32xf32>
    %124 = vector.extract_strided_slice %39 {offsets = [8, 0], sizes = [8, 32], strides = [1, 1]} : vector<16x96xf32> to vector<8x32xf32>
    %125 = vector.extract_strided_slice %39 {offsets = [8, 32], sizes = [8, 32], strides = [1, 1]} : vector<16x96xf32> to vector<8x32xf32>
    %126 = vector.extract_strided_slice %39 {offsets = [8, 64], sizes = [8, 32], strides = [1, 1]} : vector<16x96xf32> to vector<8x32xf32>
    %127 = vector.extract_strided_slice %124 {offsets = [0, 0], sizes = [8, 8], strides = [1, 1]} : vector<8x32xf32> to vector<8x8xf32>
    %128 = vector.extract_strided_slice %125 {offsets = [0, 0], sizes = [8, 8], strides = [1, 1]} : vector<8x32xf32> to vector<8x8xf32>
    %129 = vector.extract_strided_slice %126 {offsets = [0, 0], sizes = [8, 8], strides = [1, 1]} : vector<8x32xf32> to vector<8x8xf32>
    %cst_45 = arith.constant dense<0.000000e+00> : vector<8x8xf32>
    %130 = tpu.matmul %127, %128, %cst_45 {dimension_numbers = #tpu.dot_dimension_numbers<[1], [1], [0], [0], [0, 0, 1, 0], [], []>} : vector<8x8xf32>, vector<8x8xf32>, vector<8x8xf32> -> vector<8x8xf32>
    %cst_46 = arith.constant 0.353553385 : f32
    %131 = vector.broadcast %cst_46 : f32 to vector<8x8xf32>
    %132 = arith.mulf %130, %131 : vector<8x8xf32>
    %c0_47 = arith.constant 0 : index
    %c0_48 = arith.constant 0 : index
    %c0_49 = arith.constant 0 : index
    %133 = vector.load %arg6[%c0_47, %c0_48, %c0_49] : memref<4x8x8xf32, #tpu.memory_space<vmem>>, vector<1x8x8xf32>
    %134 = vector.shape_cast %133 : vector<1x8x8xf32> to vector<8x8xf32>
    %135 = arith.addf %132, %134 : vector<8x8xf32>
    %cst_50 = arith.constant dense<0xFF800000> : vector<8xf32>
    %136 = vector.multi_reduction <maximumf>, %135, %cst_50 [1] : vector<8x8xf32> to vector<8xf32>
    %137 = vector.shape_cast %136 : vector<8xf32> to vector<8x1xf32>
    %138 = vector.broadcast %137 : vector<8x1xf32> to vector<8x8xf32>
    %139 = arith.subf %135, %138 : vector<8x8xf32>
    %140 = math.exp %139 : vector<8x8xf32>
    %cst_51 = arith.constant dense<0.000000e+00> : vector<8xf32>
    %141 = vector.multi_reduction <add>, %140, %cst_51 [1] : vector<8x8xf32> to vector<8xf32>
    %142 = vector.shape_cast %141 : vector<8xf32> to vector<8x1xf32>
    %143 = tpu.reciprocal %142 {approx = true} : vector<8x1xf32> -> vector<8x1xf32>
    %144 = vector.broadcast %143 : vector<8x1xf32> to vector<8x8xf32>
    %145 = arith.mulf %140, %144 : vector<8x8xf32>
    %cst_52 = arith.constant dense<0.000000e+00> : vector<8x8xf32>
    %146 = tpu.matmul %145, %129, %cst_52 {dimension_numbers = #tpu.dot_dimension_numbers<[1], [0], [0], [1], [0, 0, 1, 1], [], []>} : vector<8x8xf32>, vector<8x8xf32>, vector<8x8xf32> -> vector<8x8xf32>
    %147 = vector.extract_strided_slice %124 {offsets = [0, 8], sizes = [8, 8], strides = [1, 1]} : vector<8x32xf32> to vector<8x8xf32>
    %148 = vector.extract_strided_slice %125 {offsets = [0, 8], sizes = [8, 8], strides = [1, 1]} : vector<8x32xf32> to vector<8x8xf32>
    %149 = vector.extract_strided_slice %126 {offsets = [0, 8], sizes = [8, 8], strides = [1, 1]} : vector<8x32xf32> to vector<8x8xf32>
    %cst_53 = arith.constant dense<0.000000e+00> : vector<8x8xf32>
    %150 = tpu.matmul %147, %148, %cst_53 {dimension_numbers = #tpu.dot_dimension_numbers<[1], [1], [0], [0], [0, 0, 1, 0], [], []>} : vector<8x8xf32>, vector<8x8xf32>, vector<8x8xf32> -> vector<8x8xf32>
    %cst_54 = arith.constant 0.353553385 : f32
    %151 = vector.broadcast %cst_54 : f32 to vector<8x8xf32>
    %152 = arith.mulf %150, %151 : vector<8x8xf32>
    %c1_55 = arith.constant 1 : index
    %c0_56 = arith.constant 0 : index
    %c0_57 = arith.constant 0 : index
    %153 = vector.load %arg6[%c1_55, %c0_56, %c0_57] : memref<4x8x8xf32, #tpu.memory_space<vmem>>, vector<1x8x8xf32>
    %154 = vector.shape_cast %153 : vector<1x8x8xf32> to vector<8x8xf32>
    %155 = arith.addf %152, %154 : vector<8x8xf32>
    %cst_58 = arith.constant dense<0xFF800000> : vector<8xf32>
    %156 = vector.multi_reduction <maximumf>, %155, %cst_58 [1] : vector<8x8xf32> to vector<8xf32>
    %157 = vector.shape_cast %156 : vector<8xf32> to vector<8x1xf32>
    %158 = vector.broadcast %157 : vector<8x1xf32> to vector<8x8xf32>
    %159 = arith.subf %155, %158 : vector<8x8xf32>
    %160 = math.exp %159 : vector<8x8xf32>
    %cst_59 = arith.constant dense<0.000000e+00> : vector<8xf32>
    %161 = vector.multi_reduction <add>, %160, %cst_59 [1] : vector<8x8xf32> to vector<8xf32>
    %162 = vector.shape_cast %161 : vector<8xf32> to vector<8x1xf32>
    %163 = tpu.reciprocal %162 {approx = true} : vector<8x1xf32> -> vector<8x1xf32>
    %164 = vector.broadcast %163 : vector<8x1xf32> to vector<8x8xf32>
    %165 = arith.mulf %160, %164 : vector<8x8xf32>
    %cst_60 = arith.constant dense<0.000000e+00> : vector<8x8xf32>
    %166 = tpu.matmul %165, %149, %cst_60 {dimension_numbers = #tpu.dot_dimension_numbers<[1], [0], [0], [1], [0, 0, 1, 1], [], []>} : vector<8x8xf32>, vector<8x8xf32>, vector<8x8xf32> -> vector<8x8xf32>
    %167 = vector.extract_strided_slice %124 {offsets = [0, 16], sizes = [8, 8], strides = [1, 1]} : vector<8x32xf32> to vector<8x8xf32>
    %168 = vector.extract_strided_slice %125 {offsets = [0, 16], sizes = [8, 8], strides = [1, 1]} : vector<8x32xf32> to vector<8x8xf32>
    %169 = vector.extract_strided_slice %126 {offsets = [0, 16], sizes = [8, 8], strides = [1, 1]} : vector<8x32xf32> to vector<8x8xf32>
    %cst_61 = arith.constant dense<0.000000e+00> : vector<8x8xf32>
    %170 = tpu.matmul %167, %168, %cst_61 {dimension_numbers = #tpu.dot_dimension_numbers<[1], [1], [0], [0], [0, 0, 1, 0], [], []>} : vector<8x8xf32>, vector<8x8xf32>, vector<8x8xf32> -> vector<8x8xf32>
    %cst_62 = arith.constant 0.353553385 : f32
    %171 = vector.broadcast %cst_62 : f32 to vector<8x8xf32>
    %172 = arith.mulf %170, %171 : vector<8x8xf32>
    %c2_63 = arith.constant 2 : index
    %c0_64 = arith.constant 0 : index
    %c0_65 = arith.constant 0 : index
    %173 = vector.load %arg6[%c2_63, %c0_64, %c0_65] : memref<4x8x8xf32, #tpu.memory_space<vmem>>, vector<1x8x8xf32>
    %174 = vector.shape_cast %173 : vector<1x8x8xf32> to vector<8x8xf32>
    %175 = arith.addf %172, %174 : vector<8x8xf32>
    %cst_66 = arith.constant dense<0xFF800000> : vector<8xf32>
    %176 = vector.multi_reduction <maximumf>, %175, %cst_66 [1] : vector<8x8xf32> to vector<8xf32>
    %177 = vector.shape_cast %176 : vector<8xf32> to vector<8x1xf32>
    %178 = vector.broadcast %177 : vector<8x1xf32> to vector<8x8xf32>
    %179 = arith.subf %175, %178 : vector<8x8xf32>
    %180 = math.exp %179 : vector<8x8xf32>
    %cst_67 = arith.constant dense<0.000000e+00> : vector<8xf32>
    %181 = vector.multi_reduction <add>, %180, %cst_67 [1] : vector<8x8xf32> to vector<8xf32>
    %182 = vector.shape_cast %181 : vector<8xf32> to vector<8x1xf32>
    %183 = tpu.reciprocal %182 {approx = true} : vector<8x1xf32> -> vector<8x1xf32>
    %184 = vector.broadcast %183 : vector<8x1xf32> to vector<8x8xf32>
    %185 = arith.mulf %180, %184 : vector<8x8xf32>
    %cst_68 = arith.constant dense<0.000000e+00> : vector<8x8xf32>
    %186 = tpu.matmul %185, %169, %cst_68 {dimension_numbers = #tpu.dot_dimension_numbers<[1], [0], [0], [1], [0, 0, 1, 1], [], []>} : vector<8x8xf32>, vector<8x8xf32>, vector<8x8xf32> -> vector<8x8xf32>
    %187 = vector.extract_strided_slice %124 {offsets = [0, 24], sizes = [8, 8], strides = [1, 1]} : vector<8x32xf32> to vector<8x8xf32>
    %188 = vector.extract_strided_slice %125 {offsets = [0, 24], sizes = [8, 8], strides = [1, 1]} : vector<8x32xf32> to vector<8x8xf32>
    %189 = vector.extract_strided_slice %126 {offsets = [0, 24], sizes = [8, 8], strides = [1, 1]} : vector<8x32xf32> to vector<8x8xf32>
    %cst_69 = arith.constant dense<0.000000e+00> : vector<8x8xf32>
    %190 = tpu.matmul %187, %188, %cst_69 {dimension_numbers = #tpu.dot_dimension_numbers<[1], [1], [0], [0], [0, 0, 1, 0], [], []>} : vector<8x8xf32>, vector<8x8xf32>, vector<8x8xf32> -> vector<8x8xf32>
    %cst_70 = arith.constant 0.353553385 : f32
    %191 = vector.broadcast %cst_70 : f32 to vector<8x8xf32>
    %192 = arith.mulf %190, %191 : vector<8x8xf32>
    %c3_71 = arith.constant 3 : index
    %c0_72 = arith.constant 0 : index
    %c0_73 = arith.constant 0 : index
    %193 = vector.load %arg6[%c3_71, %c0_72, %c0_73] : memref<4x8x8xf32, #tpu.memory_space<vmem>>, vector<1x8x8xf32>
    %194 = vector.shape_cast %193 : vector<1x8x8xf32> to vector<8x8xf32>
    %195 = arith.addf %192, %194 : vector<8x8xf32>
    %cst_74 = arith.constant dense<0xFF800000> : vector<8xf32>
    %196 = vector.multi_reduction <maximumf>, %195, %cst_74 [1] : vector<8x8xf32> to vector<8xf32>
    %197 = vector.shape_cast %196 : vector<8xf32> to vector<8x1xf32>
    %198 = vector.broadcast %197 : vector<8x1xf32> to vector<8x8xf32>
    %199 = arith.subf %195, %198 : vector<8x8xf32>
    %200 = math.exp %199 : vector<8x8xf32>
    %cst_75 = arith.constant dense<0.000000e+00> : vector<8xf32>
    %201 = vector.multi_reduction <add>, %200, %cst_75 [1] : vector<8x8xf32> to vector<8xf32>
    %202 = vector.shape_cast %201 : vector<8xf32> to vector<8x1xf32>
    %203 = tpu.reciprocal %202 {approx = true} : vector<8x1xf32> -> vector<8x1xf32>
    %204 = vector.broadcast %203 : vector<8x1xf32> to vector<8x8xf32>
    %205 = arith.mulf %200, %204 : vector<8x8xf32>
    %cst_76 = arith.constant dense<0.000000e+00> : vector<8x8xf32>
    %206 = tpu.matmul %205, %189, %cst_76 {dimension_numbers = #tpu.dot_dimension_numbers<[1], [0], [0], [1], [0, 0, 1, 1], [], []>} : vector<8x8xf32>, vector<8x8xf32>, vector<8x8xf32> -> vector<8x8xf32>
    %207 = tpu.concatenate %146, %166, %186, %206 in 1 : vector<8x8xf32>, vector<8x8xf32>, vector<8x8xf32>, vector<8x8xf32> -> vector<8x32xf32>
    %208 = tpu.concatenate %123, %207 in 0 : vector<8x32xf32>, vector<8x32xf32> -> vector<16x32xf32>
    %c0_77 = arith.constant 0 : index
    %c0_78 = arith.constant 0 : index
    %209 = vector.load %arg5[%c0_77, %c0_78] : memref<32x32xf32, #tpu.memory_space<vmem>>, vector<32x32xf32>
    %cst_79 = arith.constant dense<0.000000e+00> : vector<16x32xf32>
    %210 = tpu.matmul %208, %209, %cst_79 {dimension_numbers = #tpu.dot_dimension_numbers<[1], [0], [0], [1], [0, 0, 1, 1], [], []>} : vector<16x32xf32>, vector<32x32xf32>, vector<16x32xf32> -> vector<16x32xf32>
    %211 = arith.addf %0, %210 : vector<16x32xf32>
    %212 = vector.shape_cast %6 : vector<32xf32> to vector<1x32xf32>
    %213 = vector.broadcast %212 : vector<1x32xf32> to vector<16x32xf32>
    %214 = arith.addf %211, %213 : vector<16x32xf32>
    %c0_80 = arith.constant 0 : index
    %c0_81 = arith.constant 0 : index
    %215 = vector.load %arg7[%c0_80, %c0_81] : memref<16x32xf32, #tpu.memory_space<vmem>>, vector<16x32xf32>
    tpu.vector_store %arg7[%c0_80, %c0_81], %214 {strides = array<i32>} : memref<16x32xf32, #tpu.memory_space<vmem>>, vector<16x32xf32>,
    return
  }
  func.func @transform_0(%arg0: i32) -> (i32, i32) {
    %c0_i32 = arith.constant 0 : i32
    %c0_i32_0 = arith.constant 0 : i32
    return %arg0, %c0_i32 : i32, i32
  }
  func.func @transform_1(%arg0: i32) -> (i32, i32) {
    %c0_i32 = arith.constant 0 : i32
    %c0_i32_0 = arith.constant 0 : i32
    %c0_i32_1 = arith.constant 0 : i32
    return %c0_i32, %c0_i32_0 : i32, i32
  }
  func.func @transform_2(%arg0: i32) -> (i32, i32) {
    %c0_i32 = arith.constant 0 : i32
    %c0_i32_0 = arith.constant 0 : i32
    %c0_i32_1 = arith.constant 0 : i32
    return %c0_i32, %c0_i32_0 : i32, i32
  }
  func.func @transform_3(%arg0: i32) -> (i32, i32) {
    %c0_i32 = arith.constant 0 : i32
    %c0_i32_0 = arith.constant 0 : i32
    %c0_i32_1 = arith.constant 0 : i32
    return %c0_i32, %c0_i32_0 : i32, i32
  }
  func.func @transform_4(%arg0: i32) -> (i32, i32) {
    %c0_i32 = arith.constant 0 : i32
    %c0_i32_0 = arith.constant 0 : i32
    %c0_i32_1 = arith.constant 0 : i32
    return %c0_i32, %c0_i32_0 : i32, i32
  }
  func.func @transform_5(%arg0: i32) -> (i32, i32, i32) {
    %c0_i32 = arith.constant 0 : i32
    %c0_i32_0 = arith.constant 0 : i32
    %c0_i32_1 = arith.constant 0 : i32
    %c0_i32_2 = arith.constant 0 : i32
    return %c0_i32, %c0_i32_0, %c0_i32_1 : i32, i32, i32
  }
  func.func @transform_6(%arg0: i32) -> (i32, i32) {
    %c0_i32 = arith.constant 0 : i32
    %c0_i32_0 = arith.constant 0 : i32
    return %arg0, %c0_i32 : i32, i32
  }
}

</mosaic_0001>

<bundles_post_ra>
// kernel: tpu_custom_call.1
= control target key start
LH: loop header
LB: loop body
LE: loop exit
PB: predicated region body
PF: predicated region fallthrough
CT: control target
= control target key end

     0   :  { %11 = vsyncpa [#allocation3], 0  ;;  %s2439_s0 = inlined_call_operand.hbm [shape: f32[16,32], index: 0, kind: input, shape index: {}]   ;;  %s2440_s1 = inlined_call_operand.hbm [shape: f32[3,32], index: 1, kind: input, shape index: {}]   ;;  %s2441_s2 = inlined_call_operand.hbm [shape: f32[32,96], index: 2, kind: input, shape index: {}]   ;;  %s2442_s3 = inlined_call_operand.vmem [shape: f32[1,96], index: 3, kind: input, shape index: {}]   ;;  %s2443_s4 = inlined_call_operand.hbm [shape: f32[32,32], index: 4, kind: input, shape index: {}]   ;;  %s2444_s5 = inlined_call_operand.hbm [shape: f32[4,8,8], index: 5, kind: input, shape index: {}]   ;;  %s2445_s6 = inlined_call_operand.hbm [shape: f32[16,32], index: 6, kind: output, shape index: {}]  }
   0x1   :  { %12 = vsyncpa [#allocation6], 0 }
   0x2   :  { %13 = vsyncpa [#allocation9], 0 }
   0x3   :  { %14 = vsyncpa [#allocation4], 0  ;;  %s2108_s21 = smov [#allocation5]   ;;  %s1968_s25 = scalar_lea.hbm %s2440_s1, 64 }
   0x4   :  { %s33_s22 = sshll.u32 %s2108_s21, 4  ;;  %p1969_p0 = scmp.ne.s32.totalorder %s2440_s1, %s1968_s25  ;;  %s34_s22 = int_to_ptr.vmem [resolvable:$true] %s33_s22 }
   0x5   :  { %p1972_p1 = scmp.lt.u32.totalorder %s1968_s25, %s2440_s1 }
   0x7   :  { %p1974_p2 = pnand %p1972_p1, %p1969_p0 }
   0x9   :  { %1977 = shalt.err (!%p1974_p2)
}
   0xa   :  { %s1978_s30 = scalar_lea.vmem %s34_s22, 64  ;;  %p1983_p4 = scmp.lt.s32.totalorder %s34_s22, %s34_s22 }
   0xb   :  { %p1979_p3 = scmp.ne.s32.totalorder %s34_s22, %s1978_s30  ;;  %p1984_p5 = scmp.lt.s32.totalorder %s1978_s30, %s1978_s30 }
   0xd   :  { %p1985_p6 = por %p1984_p5, %p1983_p4 }
   0xf   :  { %p1986_p7 = pnand %p1985_p6, %p1979_p3 }
  0x11   :  { %1989 = shalt.err (!%p1986_p7)
}
  0x12   :  { %36 = dma.hbm_to_vmem [thread:$0]  %s2440_s1, 64, %s34_s22, [#allocation6]  }
  0x13   :  { %s2109_s9 = smov [#allocation8]   ;;  %s2110_s11 = smov [#allocation2]  }
  0x14   :  { %s56_s10 = sshll.u32 %s2109_s9, 4  ;;  %s20_s12 = sshll.u32 %s2110_s11, 4  ;;  %s57_s10 = int_to_ptr.vmem [resolvable:$true] %s56_s10  ;;  %s21_s12 = int_to_ptr.vmem [resolvable:$true] %s20_s12 }
  0x15   :  { %s1990_s15 = scalar_lea.hbm %s2443_s4, 512 }
  0x16   :  { %p1991_p8 = scmp.ne.s32.totalorder %s2443_s4, %s1990_s15  ;;  %p1994_p9 = scmp.lt.u32.totalorder %s1990_s15, %s2443_s4 }
  0x18   :  { %p1996_p10 = pnand %p1994_p9, %p1991_p8 }
  0x1a   :  { %1999 = shalt.err (!%p1996_p10)
}
  0x1b   :  { %s2000_s1 = scalar_lea.vmem %s57_s10, 512  ;;  %p2005_p12 = scmp.lt.s32.totalorder %s57_s10, %s57_s10 }
  0x1c   :  { %p2001_p11 = scmp.ne.s32.totalorder %s57_s10, %s2000_s1  ;;  %p2006_p13 = scmp.lt.s32.totalorder %s2000_s1, %s2000_s1 }
  0x1e   :  { %p2007_p0 = por %p2006_p13, %p2005_p12 }
  0x20   :  { %p2008_p1 = pnand %p2007_p0, %p2001_p11 }
  0x22   :  { %2011 = shalt.err (!%p2008_p1)
}
  0x23   :  { %s2111_s20 = smov 128   ;;  %s2112_s21 = smov 8  }
  0x24   :  { %62 = dma.hbm_to_vmem [thread:$0]  %s2443_s4, 512, %s57_s10, [#allocation9], %s2111_s20, %s2111_s20, %s2112_s21  }
  0x25   :  { %s2012_s26 = scalar_lea.hbm %s2439_s0, 256 }
  0x26   :  { %p2013_p2 = scmp.ne.s32.totalorder %s2439_s0, %s2012_s26  ;;  %p2016_p3 = scmp.lt.u32.totalorder %s2012_s26, %s2439_s0 }
  0x28   :  { %p2018_p4 = pnand %p2016_p3, %p2013_p2 }
  0x2a   :  { %2021 = shalt.err (!%p2018_p4)
}
  0x2b   :  { %s2022_s7 = scalar_lea.vmem %s21_s12, 256  ;;  %p2027_p6 = scmp.lt.s32.totalorder %s21_s12, %s21_s12 }
  0x2c   :  { %p2023_p5 = scmp.ne.s32.totalorder %s21_s12, %s2022_s7  ;;  %p2028_p7 = scmp.lt.s32.totalorder %s2022_s7, %s2022_s7 }
  0x2e   :  { %p2029_p8 = por %p2028_p7, %p2027_p6 }
  0x30   :  { %p2030_p9 = pnand %p2029_p8, %p2023_p5 }
  0x32   :  { %2033 = shalt.err (!%p2030_p9)
}
  0x33   :  { %26 = dma.hbm_to_vmem [thread:$0]  %s2439_s0, 256, %s21_s12, [#allocation3], %s2111_s20, %s2111_s20, %s2112_s21  }
  0x34   :  { %s2113_s9 = smov [#allocation7]   ;;  %s2114_s11 = smov [#allocation10]  }
  0x35   :  { %s42_s10 = sshll.u32 %s2113_s9, 4  ;;  %s68_s13 = sshll.u32 %s2114_s11, 4  ;;  %s43_s10 = int_to_ptr.vmem [resolvable:$true] %s42_s10  ;;  %s69_s13 = int_to_ptr.vmem [resolvable:$true] %s68_s13 }
  0x36   :  { %s2034_s16 = scalar_lea.hbm %s2441_s2, 512 }
  0x37   :  { %p2035_p10 = scmp.ne.s32.totalorder %s2441_s2, %s2034_s16  ;;  %p2038_p11 = scmp.lt.u32.totalorder %s2034_s16, %s2441_s2 }
  0x39   :  { %p2040_p12 = pnand %p2038_p11, %p2035_p10 }
  0x3b   :  { %2043 = shalt.err (!%p2040_p12)
}
  0x3c   :  { %s2044_s0 = scalar_lea.vmem %s43_s10, 512  ;;  %p2049_p0 = scmp.lt.s32.totalorder %s43_s10, %s43_s10 }
  0x3d   :  { %p2045_p13 = scmp.ne.s32.totalorder %s43_s10, %s2044_s0  ;;  %p2050_p1 = scmp.lt.s32.totalorder %s2044_s0, %s2044_s0 }
  0x3f   :  { %p2051_p2 = por %p2050_p1, %p2049_p0 }
  0x41   :  { %p2052_p3 = pnand %p2051_p2, %p2045_p13 }
  0x43   :  { %2055 = shalt.err (!%p2052_p3)
}
  0x44   :  { %48 = dma.hbm_to_vmem [thread:$0]  %s2441_s2, 512, %s43_s10, [#allocation6], %s2111_s20, %s2111_s20, %s2112_s21  }
  0x45   :  { %s2056_s25 = scalar_lea.hbm %s2444_s5, 512 }
  0x46   :  { %p2057_p4 = scmp.ne.s32.totalorder %s2444_s5, %s2056_s25  ;;  %p2060_p5 = scmp.lt.u32.totalorder %s2056_s25, %s2444_s5 }
  0x48   :  { %p2062_p6 = pnand %p2060_p5, %p2057_p4 }
  0x4a   :  { %2065 = shalt.err (!%p2062_p6)
}
  0x4b   :  { %s2066_s30 = scalar_lea.vmem %s69_s13, 512  ;;  %p2071_p8 = scmp.lt.s32.totalorder %s69_s13, %s69_s13 }
  0x4c   :  { %p2067_p7 = scmp.ne.s32.totalorder %s69_s13, %s2066_s30  ;;  %p2072_p9 = scmp.lt.s32.totalorder %s2066_s30, %s2066_s30 }
  0x4e   :  { %p2073_p10 = por %p2072_p9, %p2071_p8 }
  0x50   :  { %p2074_p11 = pnand %p2073_p10, %p2067_p7 }
  0x52   :  { %2077 = shalt.err (!%p2074_p11)
}
  0x53   :  { %74 = dma.hbm_to_vmem [thread:$0]  %s2444_s5, 512, %s69_s13, [#allocation9], %s2111_s20, %s2111_s20, %s2112_s21  }
  0x54   :  { %2100 = dma.done.wait [#allocation3], 256  }
  0x55   :  { %2101 = vsyncadd [#allocation3], 4294967040 }
  0x56   :  { %2102 = dma.done.wait [#allocation6], 576  }
  0x57   :  { %2103 = vsyncadd [#allocation6], 4294966720 }
  0x58   :  { %2104 = dma.done.wait [#allocation9], 1024  }
  0x59   :  { %2105 = vsyncadd [#allocation9], 4294966272  ;;  %vm95_vm0 = vcmask 261120   ;;  %v2238_v0 = vld [vmem:[#allocation2] sm:$0xff]  ;;  %v2240_v1 = vld [vmem:[#allocation2 + $0x8] sm:$0xff]  ;;  %v2115_v36 = vmov 0.0  }
  0x5a   :  { %v96_v2 = vsel %vm95_vm0, %v2238_v0, 0.0  ;;  %v99_v3 = vsel %vm95_vm0, %v2240_v1, 0.0  ;;  %v135_v14 = vld [vmem:[#allocation7] sm:$0xff]  ;;  %v136_v15 = vld [vmem:[#allocation7 + $0x8] sm:$0xff]  ;;  %v137_v16 = vld [vmem:[#allocation7 + $0x10] sm:$0xff]  ;;  %1802 = vmatprep.subr.mxu1 %v2115_v36  ;;  %vm2116_vm1 = vmmov 0  }
  0x5b   :  { %97 = vadd.xlane.f32.xlu0 %v96_v2  ;;  %v1893_v17 = vpack.c.bf16 %v136_v15, %v135_v14  ;;  %v138_v18 = vld [vmem:[#allocation7 + $0x18] sm:$0xff]  ;;  %1804 = vmatprep.mubr.msk.f32.mxu1 %vm2116_vm1, %v2115_v36  ;;  %v1717_v37 = vld [vmem:[%s2442_s3] ss:$0 sm:$0xff]  ;;  %s2117_s8 = smov 96   ;;  %s2118_s9 = smov 88   ;;  %vm230_vm2 = vcmask 64512  }
  0x5c   :  { %v1897_v19 = vpack.c.bf16 %v138_v18, %v137_v16  ;;  %v1715_v27 = vld [vmem:[#allocation5] ss:$0 sm:$0xff]  ;;  %v1716_v29 = vld [vmem:[#allocation5 + $0x1] ss:$0 sm:$0xff]  ;;  %s2119_s10 = smov 80   ;;  %s2120_s11 = smov 72  }
  0x5d   :  { %1894 = vmatprep.subr.bf16.mxu0 %v1893_v17  ;;  %s2121_s3 = smov 120   ;;  %s2122_s13 = smov 112   ;;  %v2286_v46 = vld [vmem:[#allocation10] sm:$0xff]  ;;  %v813_v15 = vld [vmem:[#allocation10 + $0x18] sm:$0xff]  ;;  %vm915_vm3 = vcmask 130048   ;;  %vm917_vm4 = vcmask 195584  }
  0x5e   :  { %1896 = vmatpush3.bf16.msra.mxu0 %v1893_v17  ;;  %s2123_s14 = smov 104   ;;  %s2124_s15 = smov 64  }
  0x5f   :  { %100 = vadd.xlane.f32.xlu0 %v99_v3  ;;  %1898 = vmatprep.subr.bf16.mxu0 %v1897_v19  ;;  %s2125_s16 = smov 56   ;;  %s2126_s17 = smov 40  }
  0x60   :  { %s2127_s18 = smov 48   ;;  %s2128_s19 = smov 16  }
  0x61   :  { %s2129_s1 = smov 24   ;;  %s2130_s0 = smov [#allocation11]  }
  0x62   :  { %1900 = vmatpush3.bf16.msra.mxu0 %v1897_v19  ;;  %s1701_s12 = sshll.u32 %s2130_s0, 4  ;;  %s1702_s12 = int_to_ptr.vmem [resolvable:$true] %s1701_s12 }
  0x63   :  { %1822 = vmatprep.subr.mxu0 %v2115_v36  ;;  %s2078_s22 = scalar_lea.vmem %s1702_s12, 256  ;;  %p2083_p13 = scmp.lt.s32.totalorder %s1702_s12, %s1702_s12 }
  0x64   :  { %p2079_p12 = scmp.ne.s32.totalorder %s1702_s12, %s2078_s22  ;;  %p2084_p0 = scmp.lt.s32.totalorder %s2078_s22, %s2078_s22 }
  0x66   :  { %p2085_p1 = por %p2084_p0, %p2083_p13 }
  0x68   :  { %p2086_p2 = pnand %p2085_p1, %p2079_p12 }
  0xe8   :  { %v98_v4 = vpop.xlane.xlu0 %97 }
  0xe9   :  { %v103_v5 = vmul.f32 0.03125, %v98_v4 }
  0xeb   :  { %v105_v6 = vsub.f32 %v2238_v0, %v103_v5 }
  0xec   :  { %v101_v7 = vpop.xlane.xlu0 %100 }
  0xed   :  { %v104_v8 = vmul.f32 0.03125, %v101_v7  ;;  %v107_v9 = vmul.f32 %v105_v6, %v105_v6 }
  0xef   :  { %v106_v10 = vsub.f32 %v2240_v1, %v104_v8  ;;  %v109_v11 = vsel %vm95_vm0, %v107_v9, 0.0 }
  0xf0   :  { %110 = vadd.xlane.f32.xlu1 %v109_v11 }
  0xf1   :  { %v108_v12 = vmul.f32 %v106_v10, %v106_v10 }
  0xf3   :  { %v112_v13 = vsel %vm95_vm0, %v108_v12, 0.0 }
  0xf4   :  { %113 = vadd.xlane.f32.xlu1 %v112_v13 }
 0x17d   :  { %v111_v20 = vpop.xlane.xlu1 %110 }
 0x17e   :  { %v115_v21 = vmul.f32 0.03125, %v111_v20 }
 0x180   :  { %v117_v22 = vadd.f32 1e-05, %v115_v21 }
 0x181   :  { %v114_v23 = vpop.xlane.xlu1 %113 }
 0x182   :  { %1932 = vrsqrt.f32 %v117_v22  ;;  %v116_v24 = vmul.f32 0.03125, %v114_v23 }
 0x184   :  { %v118_v25 = vadd.f32 1e-05, %v116_v24 }
 0x186   :  { %1934 = vrsqrt.f32 %v118_v25 }
 0x18c   :  { %v1933_v26 = vpop.eup %1932 }
 0x18d   :  { %v121_v28 = vmul.f32 %v1933_v26, %v105_v6 }
 0x18f   :  { %v127_v30 = vmul.f32 %v1715_v27, %v121_v28 }
 0x190   :  { %v1935_v31 = vpop.eup %1934 }
 0x191   :  { %v122_v32 = vmul.f32 %v1935_v31, %v106_v10  ;;  %v133_v33 = vadd.f32 %v1716_v29, %v127_v30  ;;  %v644_v10 = vld [vmem:[#allocation10 + $0x10] sm:$0xff]  ;;  %v475_v31 = vld [vmem:[#allocation10 + $0x8] sm:$0xff] }
 0x193   :  { %v128_v34 = vmul.f32 %v1715_v27, %v122_v32  ;;  %1799 = vmatprep.mubr.msk.f32.mxu0 %vm95_vm0, %v133_v33 }
 0x195   :  { %v134_v35 = vadd.f32 %v1716_v29, %v128_v34 }
 0x197   :  { %1800 = vmatmul.mubr.msk.f32.vlgmr.msra.gmra.mrb[0].mxu0 %vm95_vm0, %v134_v35 }
 0x198   :  { %1824 = vmatprep.mubr.msk.f32.mxu0 %vm2116_vm1, %v2115_v36 }
 0x26a   :  { %v1801_v38 = vpop.f32.mrb[0].mxu0 }
 0x26b   :  { %v218_v39 = vpop.f32.mrb[1].mxu0  ;;  %v2270_v41 = vadd.f32 %v1801_v38, %v1717_v37 }
 0x26c   :  { %v2261_v40 = vadd.f32 %v1717_v37, %v218_v39 }
 0x26e   :  { %228 = vrot.lane.b32.xlu0 %v2261_v40, %s2117_s8 }
 0x272   :  { %397 = vrot.lane.b32.xlu0 %v2261_v40, %s2118_s9 }
 0x276   :  { %566 = vrot.lane.b32.xlu0 %v2261_v40, %s2119_s10 }
 0x27a   :  { %735 = vrot.lane.b32.xlu0 %v2261_v40, %s2120_s11 }
 0x27e   :  { %920 = vrot.lane.b32.xlu0 %v2270_v41, %s2117_s8 }
 0x282   :  { %1085 = vrot.lane.b32.xlu0 %v2270_v41, %s2121_s3 }
 0x286   :  { %1252 = vrot.lane.b32.xlu0 %v2270_v41, %s2122_s13 }
 0x28a   :  { %1419 = vrot.lane.b32.xlu0 %v2270_v41, %s2123_s14 }
 0x2e0   :  { %v229_v42 = vpop.permute.xlu0 %228 }
 0x2e1   :  { %1803 = vmatpush3.xpose.msk.msra.mxu1 %vm230_vm2, %v229_v42 }
 0x2e2   :  { %1807 = vmatprep.subr.mxu1 %v2115_v36 }
 0x2e4   :  { %1805 = vmatmul.mubr.msk.f32.vlgmr.msra.gmra.mrb[0].mxu1 %vm230_vm2, %v2261_v40  ;;  %v398_v43 = vpop.permute.xlu0 %397 }
 0x2e5   :  { %1809 = vmatprep.mubr.msk.f32.mxu1 %vm2116_vm1, %v2115_v36 }
 0x2e8   :  { %v567_v44 = vpop.permute.xlu0 %566 }
 0x2e9   :  { %1823 = vmatpush3.xpose.msk.msra.mxu0 %vm230_vm2, %v567_v44 }
 0x2ea   :  { %1832 = vmatprep.subr.mxu0 %v2115_v36 }
 0x2ec   :  { %v736_v58 = vpop.permute.xlu0 %735 }
 0x2f0   :  { %v921_v61 = vpop.permute.xlu0 %920 }
 0x2f4   :  { %v1086_v2 = vpop.permute.xlu0 %1085 }
 0x2f8   :  { %v1253_v6 = vpop.permute.xlu0 %1252 }
 0x2fc   :  { %v1420_v8 = vpop.permute.xlu0 %1419 }
 0x3b7   :  { %v301_v45 = vpop.f32.mrb[0].mxu1 }
 0x3b8   :  { %v305_v47 = vmul.f32 0.35355338, %v301_v45  ;;  %v1806_v48 = vpop.f32.mrb[1].mxu1 }
 0x3ba   :  { %v307_v49 = vadd.f32 %v2286_v46, %v305_v47 }
 0x3bc   :  { %v308_v50 = vsel %vm230_vm2, %v307_v49, -inf }
 0x3bd   :  { %309 = vmax.xlane.f32.xlu1 %v308_v50 }
 0x3ce   :  { %319 = vrot.lane.b32.xlu1 %v2261_v40, %s2124_s15 }
 0x3d2   :  { %395 = vrot.lane.b32.xlu1 %v2261_v40, %s2121_s3 }
 0x44a   :  { %v310_v51 = vpop.xlane.xlu1 %309 }
 0x44b   :  { %v311_v52 = vsub.f32 %v307_v49, %v310_v51 }
 0x44d   :  { %v312_v53 = vmul.f32 1.442695, %v311_v52 }
 0x44e   :  { %v320_v54 = vpop.permute.xlu1 %319 }
 0x44f   :  { %1936 = vpow2.f32 %v312_v53  ;;  %1808 = vmatpush3.msra.mxu1 %v320_v54 }
 0x450   :  { %1812 = vmatprep.subr.mxu1 %v2115_v36 }
 0x452   :  { %v396_v57 = vpop.permute.xlu1 %395 }
 0x459   :  { %v1937_v55 = vpop.eup %1936 }
 0x45a   :  { %v314_v56 = vsel %vm230_vm2, %v1937_v55, 0.0 }
 0x45b   :  { %315 = vadd.xlane.f32.xlu1 %v314_v56 }
 0x46c   :  { %564 = vrot.lane.b32.xlu1 %v2261_v40, %s2122_s13 }
 0x470   :  { %733 = vrot.lane.b32.xlu1 %v2261_v40, %s2123_s14 }
 0x474   :  { %1087 = vrot.lane.b32.xlu1 %v2270_v41, %s2118_s9 }
 0x478   :  { %1254 = vrot.lane.b32.xlu1 %v2270_v41, %s2119_s10 }
 0x47c   :  { %1421 = vrot.lane.b32.xlu1 %v2270_v41, %s2120_s11 }
 0x4e8   :  { %v316_v59 = vpop.xlane.xlu1 %315 }
 0x4e9   :  { %1938 = vrcp.f32 %v316_v59 }
 0x4ec   :  { %v565_v60 = vpop.permute.xlu1 %564 }
 0x4ed   :  { %1825 = vmatmul.mubr.msk.f32.vlgmr.msra.gmra.mrb[2].mxu0 %vm230_vm2, %v565_v60 }
 0x4ee   :  { %1833 = vmatpush3.xpose.msk.msra.mxu0 %vm230_vm2, %v736_v58  ;;  %1834 = vmatprep.mubr.msk.f32.mxu0 %vm2116_vm1, %v2115_v36 }
 0x4ef   :  { %1842 = vmatprep.subr.mxu0 %v2115_v36 }
 0x4f0   :  { %v734_v62 = vpop.permute.xlu1 %733 }
 0x4f1   :  { %1835 = vmatmul.mubr.msk.f32.vlgmr.msra.gmra.mrb[4].mxu0 %vm230_vm2, %v734_v62 }
 0x4f2   :  { %1843 = vmatpush3.xpose.msk.msra.mxu0 %vm230_vm2, %v921_v61  ;;  %1844 = vmatprep.mubr.msk.f32.mxu0 %vm2116_vm1, %v2115_v36 }
 0x4f3   :  { %v1939_v63 = vpop.eup %1938  ;;  %1852 = vmatprep.subr.mxu0 %v2115_v36 }
 0x4f4   :  { %v318_v3 = vmul.f32 %v1939_v63, %v1937_v55  ;;  %v1088_v4 = vpop.permute.xlu1 %1087 }
 0x4f5   :  { %1845 = vmatmul.mubr.msk.f32.vlgmr.msra.gmra.mrb[6].mxu0 %vm230_vm2, %v2270_v41 }
 0x4f6   :  { %1853 = vmatpush3.xpose.msk.msra.mxu0 %vm230_vm2, %v1088_v4  ;;  %1810 = vmatmul.mubr.msk.f32.vlgmr.msra.gmra.mrb[2].mxu1 %vm230_vm2, %v318_v3 }
 0x4f7   :  { %1813 = vmatpush3.xpose.msk.msra.mxu1 %vm230_vm2, %v398_v43  ;;  %1854 = vmatprep.mubr.msk.f32.mxu0 %vm2116_vm1, %v2115_v36 }
 0x4f8   :  { %v1255_v5 = vpop.permute.xlu1 %1254  ;;  %1862 = vmatprep.subr.mxu0 %v2115_v36  ;;  %1814 = vmatprep.mubr.msk.f32.mxu1 %vm2116_vm1, %v2115_v36 }
 0x4f9   :  { %1855 = vmatmul.mubr.msk.f32.vlgmr.msra.gmra.mrb[8].mxu0 %vm230_vm2, %v1086_v2  ;;  %1817 = vmatprep.subr.mxu1 %v2115_v36 }
 0x4fa   :  { %1863 = vmatpush3.xpose.msk.msra.mxu0 %vm230_vm2, %v1255_v5  ;;  %1815 = vmatmul.mubr.msk.f32.vlgmr.msra.gmra.mrb[4].mxu1 %vm230_vm2, %v396_v57 }
 0x4fb   :  { %1864 = vmatprep.mubr.msk.f32.mxu0 %vm2116_vm1, %v2115_v36  ;;  %1872 = vmatprep.subr.mxu0 %v2115_v36 }
 0x4fc   :  { %v1422_v7 = vpop.permute.xlu1 %1421  ;;  %1819 = vmatprep.mubr.msk.f32.mxu1 %vm2116_vm1, %v2115_v36 }
 0x4fd   :  { %1865 = vmatmul.mubr.msk.f32.vlgmr.msra.gmra.mrb[10].mxu0 %vm230_vm2, %v1253_v6 }
 0x4fe   :  { %1873 = vmatpush3.xpose.msk.msra.mxu0 %vm230_vm2, %v1422_v7  ;;  %1874 = vmatprep.mubr.msk.f32.mxu0 %vm2116_vm1, %v2115_v36 }
 0x501   :  { %1875 = vmatmul.mubr.msk.f32.vlgmr.msra.gmra.mrb[12].mxu0 %vm230_vm2, %v1420_v8 }
 0x5c0   :  { %v638_v9 = vpop.f32.mrb[2].mxu0 }
 0x5c1   :  { %v642_v11 = vmul.f32 0.35355338, %v638_v9  ;;  %v1826_v12 = vpop.f32.mrb[3].mxu0 }
 0x5c3   :  { %v645_v13 = vadd.f32 %v644_v10, %v642_v11 }
 0x5c4   :  { %v807_v14 = vpop.f32.mrb[4].mxu0 }
 0x5c5   :  { %v811_v16 = vmul.f32 0.35355338, %v807_v14  ;;  %v1836_v17 = vpop.f32.mrb[5].mxu0  ;;  %v646_v18 = vsel %vm230_vm2, %v645_v13, -inf }
 0x5c6   :  { %647 = vmax.xlane.f32.xlu0 %v646_v18 }
 0x5c7   :  { %v814_v19 = vadd.f32 %v813_v15, %v811_v16 }
 0x5c8   :  { %v992_v20 = vpop.f32.mrb[6].mxu0 }
 0x5c9   :  { %v996_v21 = vmul.f32 0.35355338, %v992_v20  ;;  %v2340_v22 = vpop.f32.mrb[2].mxu1  ;;  %v1846_v23 = vpop.f32.mrb[7].mxu0  ;;  %v815_v24 = vsel %vm230_vm2, %v814_v19, -inf }
 0x5ca   :  { %v1811_v25 = vpop.f32.mrb[3].mxu1  ;;  %816 = vmax.xlane.f32.xlu0 %v815_v24 }
 0x5cb   :  { %v997_v26 = vadd.f32 %v996_v21, %v2286_v46 }
 0x5cc   :  { %v1159_v27 = vpop.f32.mrb[8].mxu0 }
 0x5cd   :  { %v469_v28 = vpop.f32.mrb[4].mxu1  ;;  %v1856_v29 = vpop.f32.mrb[9].mxu0  ;;  %v998_v30 = vsel %vm230_vm2, %v997_v26, -inf  ;;  %v1163_v32 = vmul.f32 0.35355338, %v1159_v27 }
 0x5ce   :  { %v473_v33 = vmul.f32 0.35355338, %v469_v28  ;;  %v1816_v34 = vpop.f32.mrb[5].mxu1  ;;  %999 = vmax.xlane.f32.xlu0 %v998_v30 }
 0x5cf   :  { %v1164_v43 = vadd.f32 %v1163_v32, %v475_v31 }
 0x5d0   :  { %v1326_v35 = vpop.f32.mrb[10].mxu0  ;;  %v476_v37 = vadd.f32 %v475_v31, %v473_v33 }
 0x5d1   :  { %v1330_v38 = vmul.f32 0.35355338, %v1326_v35  ;;  %v1866_v39 = vpop.f32.mrb[11].mxu0  ;;  %v1165_v49 = vsel %vm230_vm2, %v1164_v43, -inf }
 0x5d2   :  { %v477_v42 = vsel %vm230_vm2, %v476_v37, -inf }
 0x5d3   :  { %478 = vmax.xlane.f32.xlu1 %v477_v42  ;;  %v1331_v44 = vadd.f32 %v1330_v38, %v644_v10 }
 0x5d4   :  { %v1493_v45 = vpop.f32.mrb[12].mxu0 }
 0x5d5   :  { %v1497_v46 = vmul.f32 0.35355338, %v1493_v45  ;;  %v1876_v47 = vpop.f32.mrb[13].mxu0  ;;  %v1332_v48 = vsel %vm230_vm2, %v1331_v44, -inf }
 0x5d6   :  { %1333 = vmax.xlane.f32.xlu0 %v1332_v48 }
 0x5d7   :  { %1166 = vmax.xlane.f32.xlu1 %v1165_v49  ;;  %v1498_v50 = vadd.f32 %v1497_v46, %v813_v15 }
 0x5d9   :  { %v1499_v51 = vsel %vm230_vm2, %v1498_v50, -inf }
 0x5db   :  { %1500 = vmax.xlane.f32.xlu1 %v1499_v51 }
 0x653   :  { %v648_v52 = vpop.xlane.xlu0 %647 }
 0x654   :  { %v649_v53 = vsub.f32 %v645_v13, %v648_v52 }
 0x656   :  { %v650_v54 = vmul.f32 1.442695, %v649_v53 }
 0x657   :  { %v817_v55 = vpop.xlane.xlu0 %816 }
 0x658   :  { %1940 = vpow2.f32 %v650_v54  ;;  %v818_v56 = vsub.f32 %v814_v19, %v817_v55 }
 0x65a   :  { %v819_v57 = vmul.f32 1.442695, %v818_v56 }
 0x65b   :  { %v1000_v58 = vpop.xlane.xlu0 %999 }
 0x65c   :  { %1942 = vpow2.f32 %v819_v57  ;;  %v1001_v59 = vsub.f32 %v997_v26, %v1000_v58  ;;  %v1601_v57 = vld [vmem:[#allocation8] sm:$0xff]  ;;  %v1602_v58 = vld [vmem:[#allocation8 + $0x8] sm:$0xff] }
 0x65e   :  { %v1002_v60 = vmul.f32 1.442695, %v1001_v59 }
 0x660   :  { %1944 = vpow2.f32 %v1002_v60  ;;  %v479_v61 = vpop.xlane.xlu1 %478  ;;  %v1901_v60 = vpack.c.bf16 %v1602_v58, %v1601_v57 }
 0x661   :  { %v480_v8 = vsub.f32 %v476_v37, %v479_v61 }
 0x662   :  { %v2349_v62 = vpop.eup %1940  ;;  %1902 = vmatprep.subr.bf16.mxu0 %v1901_v60 }
 0x663   :  { %v1334_v63 = vpop.xlane.xlu0 %1333  ;;  %v652_v2 = vsel %vm230_vm2, %v2349_v62, 0.0  ;;  %v481_v14 = vmul.f32 1.442695, %v480_v8  ;;  %1904 = vmatpush3.bf16.msra.mxu0 %v1901_v60 }
 0x664   :  { %v1335_v3 = vsub.f32 %v1331_v44, %v1334_v63  ;;  %v1167_v4 = vpop.xlane.xlu1 %1166  ;;  %653 = vadd.xlane.f32.xlu1 %v652_v2  ;;  %v1604_v63 = vld [vmem:[#allocation8 + $0x18] sm:$0xff] }
 0x665   :  { %v1168_v5 = vsub.f32 %v1164_v43, %v1167_v4 }
 0x666   :  { %v2353_v6 = vpop.eup %1942  ;;  %v1336_v7 = vmul.f32 1.442695, %v1335_v3 }
 0x667   :  { %v1169_v9 = vmul.f32 1.442695, %v1168_v5  ;;  %v821_v10 = vsel %vm230_vm2, %v2353_v6, 0.0 }
 0x668   :  { %1946 = vpow2.f32 %v1336_v7  ;;  %v1501_v11 = vpop.xlane.xlu1 %1500  ;;  %822 = vadd.xlane.f32.xlu0 %v821_v10 }
 0x669   :  { %1948 = vpow2.f32 %v1169_v9  ;;  %v1502_v12 = vsub.f32 %v1498_v50, %v1501_v11 }
 0x66a   :  { %v2357_v13 = vpop.eup %1944 }
 0x66b   :  { %v1503_v15 = vmul.f32 1.442695, %v1502_v12  ;;  %v1004_v16 = vsel %vm230_vm2, %v2357_v13, 0.0 }
 0x66c   :  { %1005 = vadd.xlane.f32.xlu1 %v1004_v16 }
 0x66d   :  { %1950 = vpow2.f32 %v1503_v15 }
 0x66e   :  { %1952 = vpow2.f32 %v481_v14 }
 0x672   :  { %v2361_v17 = vpop.eup %1946 }
 0x673   :  { %v2363_v18 = vpop.eup %1948  ;;  %v1338_v19 = vsel %vm230_vm2, %v2361_v17, 0.0 }
 0x674   :  { %1339 = vadd.xlane.f32.xlu1 %v1338_v19  ;;  %v1171_v20 = vsel %vm230_vm2, %v2363_v18, 0.0 }
 0x675   :  { %1172 = vadd.xlane.f32.xlu0 %v1171_v20 }
 0x677   :  { %v2369_v21 = vpop.eup %1950 }
 0x678   :  { %v1505_v23 = vsel %vm230_vm2, %v2369_v21, 0.0  ;;  %v1953_v24 = vpop.eup %1952 }
 0x679   :  { %1506 = vadd.xlane.f32.xlu0 %v1505_v23  ;;  %v483_v25 = vsel %vm230_vm2, %v1953_v24, 0.0 }
 0x67d   :  { %484 = vadd.xlane.f32.xlu0 %v483_v25  ;;  %v1746_v25 = vld [vmem:[#allocation5 + $0x2] ss:$0 sm:$0xff] }
 0x685   :  { %488 = vrot.lane.b32.xlu1 %v2261_v40, %s2125_s16 }
 0x689   :  { %826 = vrot.lane.b32.xlu1 %v2261_v40, %s2126_s17 }
 0x68d   :  { %1009 = vrot.lane.b32.xlu1 %v2270_v41, %s2124_s15 }
 0x691   :  { %1176 = vrot.lane.b32.xlu1 %v2270_v41, %s2125_s16 }
 0x693   :  { %657 = vrot.lane.b32.xlu0 %v2261_v40, %s2127_s18 }
 0x695   :  { %1510 = vrot.lane.b32.xlu1 %v2270_v41, %s2126_s17 }
 0x697   :  { %1343 = vrot.lane.b32.xlu0 %v2270_v41, %s2127_s18 }
 0x6f1   :  { %v654_v26 = vpop.xlane.xlu1 %653 }
 0x6f5   :  { %v823_v28 = vpop.xlane.xlu0 %822 }
 0x6f9   :  { %v1006_v27 = vpop.xlane.xlu1 %1005 }
 0x701   :  { %v1340_v29 = vpop.xlane.xlu1 %1339 }
 0x702   :  { %v1173_v30 = vpop.xlane.xlu0 %1172 }
 0x705   :  { %v489_v31 = vpop.permute.xlu1 %488 }
 0x706   :  { %1818 = vmatpush3.msra.mxu1 %v489_v31  ;;  %v1507_v32 = vpop.xlane.xlu0 %1506 }
 0x707   :  { %1827 = vmatprep.subr.mxu1 %v2115_v36 }
 0x709   :  { %v827_v37 = vpop.permute.xlu1 %826 }
 0x70a   :  { %v485_v33 = vpop.xlane.xlu0 %484 }
 0x70b   :  { %1954 = vrcp.f32 %v485_v33 }
 0x70c   :  { %1956 = vrcp.f32 %v654_v26 }
 0x70d   :  { %1958 = vrcp.f32 %v823_v28  ;;  %v1010_v43 = vpop.permute.xlu1 %1009 }
 0x70e   :  { %1960 = vrcp.f32 %v1006_v27  ;;  %v658_v41 = vpop.permute.xlu0 %657 }
 0x70f   :  { %1962 = vrcp.f32 %v1173_v30 }
 0x710   :  { %1964 = vrcp.f32 %v1340_v29 }
 0x711   :  { %1966 = vrcp.f32 %v1507_v32  ;;  %v1177_v47 = vpop.permute.xlu1 %1176 }
 0x712   :  { %v1344_v50 = vpop.permute.xlu0 %1343 }
 0x715   :  { %v1955_v34 = vpop.eup %1954  ;;  %v1511_v53 = vpop.permute.xlu1 %1510 }
 0x716   :  { %v487_v40 = vmul.f32 %v1955_v34, %v1953_v24  ;;  %v1957_v35 = vpop.eup %1956 }
 0x717   :  { %v656_v38 = vmul.f32 %v1957_v35, %v2349_v62  ;;  %v1959_v39 = vpop.eup %1958  ;;  %v1603_v62 = vld [vmem:[#allocation8 + $0x10] sm:$0xff] }
 0x718   :  { %1820 = vmatmul.mubr.msk.f32.vlgmr.msra.gmra.mrb[6].mxu1 %vm230_vm2, %v487_v40  ;;  %v825_v42 = vmul.f32 %v1959_v39, %v2353_v6  ;;  %v1961_v44 = vpop.eup %1960  ;;  %v1905_v2 = vpack.c.bf16 %v1604_v63, %v1603_v62 }
 0x719   :  { %1828 = vmatpush3.msra.mxu1 %v658_v41  ;;  %1829 = vmatprep.mubr.msk.f32.mxu1 %vm2116_vm1, %v2115_v36  ;;  %v1008_v45 = vmul.f32 %v1961_v44, %v2357_v13  ;;  %v1963_v46 = vpop.eup %1962 }
 0x71a   :  { %1837 = vmatprep.subr.mxu1 %v2115_v36  ;;  %v1175_v48 = vmul.f32 %v1963_v46, %v2363_v18  ;;  %v1965_v49 = vpop.eup %1964  ;;  %1906 = vmatprep.subr.bf16.mxu0 %v1905_v2 }
 0x71b   :  { %v1342_v51 = vmul.f32 %v1965_v49, %v2361_v17  ;;  %v1967_v52 = vpop.eup %1966  ;;  %1908 = vmatpush3.bf16.msra.mxu0 %v1905_v2 }
 0x71c   :  { %1830 = vmatmul.mubr.msk.f32.vlgmr.msra.gmra.mrb[8].mxu1 %vm230_vm2, %v656_v38  ;;  %v1509_v54 = vmul.f32 %v1967_v52, %v2369_v21 }
 0x71d   :  { %1838 = vmatpush3.msra.mxu1 %v827_v37  ;;  %1839 = vmatprep.mubr.msk.f32.mxu1 %vm2116_vm1, %v2115_v36 }
 0x71e   :  { %1847 = vmatprep.subr.mxu1 %v2115_v36 }
 0x720   :  { %1840 = vmatmul.mubr.msk.f32.vlgmr.msra.gmra.mrb[10].mxu1 %vm230_vm2, %v825_v42 }
 0x721   :  { %1848 = vmatpush3.msra.mxu1 %v1010_v43  ;;  %1849 = vmatprep.mubr.msk.f32.mxu1 %vm2116_vm1, %v2115_v36 }
 0x722   :  { %1857 = vmatprep.subr.mxu1 %v2115_v36 }
 0x724   :  { %1850 = vmatmul.mubr.msk.f32.vlgmr.msra.gmra.mrb[12].mxu1 %vm230_vm2, %v1008_v45 }
 0x725   :  { %1858 = vmatpush3.msra.mxu1 %v1177_v47  ;;  %1859 = vmatprep.mubr.msk.f32.mxu1 %vm2116_vm1, %v2115_v36 }
 0x726   :  { %1867 = vmatprep.subr.mxu1 %v2115_v36 }
 0x728   :  { %1860 = vmatmul.mubr.msk.f32.vlgmr.msra.gmra.mrb[14].mxu1 %vm230_vm2, %v1175_v48 }
 0x729   :  { %1868 = vmatpush3.msra.mxu1 %v1344_v50  ;;  %1869 = vmatprep.mubr.msk.f32.mxu1 %vm2116_vm1, %v2115_v36 }
 0x72a   :  { %1877 = vmatprep.subr.mxu1 %v2115_v36 }
 0x72c   :  { %1870 = vmatmul.mubr.msk.f32.vlgmr.msra.gmra.mrb[16].mxu1 %vm230_vm2, %v1342_v51 }
 0x72d   :  { %1878 = vmatpush3.msra.mxu1 %v1511_v53  ;;  %1879 = vmatprep.mubr.msk.f32.mxu1 %vm2116_vm1, %v2115_v36 }
 0x730   :  { %1880 = vmatmul.mubr.msk.f32.vlgmr.msra.gmra.mrb[18].mxu1 %vm230_vm2, %v1509_v54 }
 0x7eb   :  { %v560_v55 = vpop.f32.mrb[6].mxu1 }
 0x7ec   :  { %903 = vrot.lane.b32.xlu0 %v560_v55, %s2112_s21  ;;  %v1821_v56 = vpop.f32.mrb[7].mxu1 }
 0x7ef   :  { %v729_v59 = vpop.f32.mrb[8].mxu1 }
 0x7f0   :  { %907 = vrot.lane.b32.xlu1 %v729_v59, %s2128_s19  ;;  %v1831_v61 = vpop.f32.mrb[9].mxu1 }
 0x7f3   :  { %v898_v36 = vpop.f32.mrb[10].mxu1 }
 0x7f4   :  { %911 = vrot.lane.b32.xlu1 %v898_v36, %s2129_s1  ;;  %v1841_v3 = vpop.f32.mrb[11].mxu1 }
 0x7f7   :  { %v1081_v4 = vpop.f32.mrb[12].mxu1 }
 0x7f8   :  { %v1851_v5 = vpop.f32.mrb[13].mxu1 }
 0x7fb   :  { %v1248_v6 = vpop.f32.mrb[14].mxu1 }
 0x7fc   :  { %1587 = vrot.lane.b32.xlu0 %v1248_v6, %s2112_s21  ;;  %v1861_v7 = vpop.f32.mrb[15].mxu1 }
 0x7ff   :  { %v1415_v8 = vpop.f32.mrb[16].mxu1 }
 0x800   :  { %1591 = vrot.lane.b32.xlu0 %v1415_v8, %s2128_s19  ;;  %v1871_v9 = vpop.f32.mrb[17].mxu1 }
 0x803   :  { %v1582_v10 = vpop.f32.mrb[18].mxu1 }
 0x804   :  { %1595 = vrot.lane.b32.xlu1 %v1582_v10, %s2129_s1  ;;  %v1881_v11 = vpop.f32.mrb[19].mxu1 }
 0x85e   :  { %v904_v12 = vpop.permute.xlu0 %903 }
 0x85f   :  { %v914_v14 = vsel %vm230_vm2, %v2340_v22, %v904_v12 }
 0x862   :  { %v908_v13 = vpop.permute.xlu1 %907 }
 0x863   :  { %v916_v15 = vsel %vm915_vm3, %v914_v14, %v908_v13 }
 0x866   :  { %v912_v16 = vpop.permute.xlu1 %911 }
 0x867   :  { %v918_v17 = vsel %vm917_vm4, %v916_v15, %v912_v16 }
 0x868   :  { %1890 = vmatprep.mubr.msk.f32.mxu0 %vm95_vm0, %v918_v17 }
 0x86e   :  { %v1588_v18 = vpop.permute.xlu0 %1587 }
 0x86f   :  { %v1598_v20 = vsel %vm230_vm2, %v1081_v4, %v1588_v18 }
 0x872   :  { %v1592_v19 = vpop.permute.xlu0 %1591 }
 0x873   :  { %v1599_v21 = vsel %vm915_vm3, %v1598_v20, %v1592_v19 }
 0x876   :  { %v1596_v23 = vpop.permute.xlu1 %1595 }
 0x877   :  { %v1600_v24 = vsel %vm917_vm4, %v1599_v21, %v1596_v23 }
 0x878   :  { %1891 = vmatmul.mubr.msk.f32.vlgmr.msra.gmra.mrb[14].mxu0 %vm95_vm0, %v1600_v24 }
 0x94b   :  { %v1892_v26 = vpop.f32.mrb[14].mxu0 }
 0x94c   :  { %v1687_v27 = vadd.f32 %v1892_v26, %v2240_v1  ;;  %v1677_v28 = vpop.f32.mrb[15].mxu0 }
 0x94d   :  { %v1686_v22 = vadd.f32 %v1677_v28, %v2238_v0 }
 0x94e   :  { %v1693_v29 = vadd.f32 %v1746_v25, %v1687_v27 }
 0x94f   :  { %v1692_v30 = vadd.f32 %v1746_v25, %v1686_v22 }
 0x950   :  { %1695 = vst.msk [vmem:[#allocation11 + $0x8] sm:$0xff] %vm95_vm0, %v1693_v29 }
 0x951   :  { %1694 = vst.msk [vmem:[#allocation11] sm:$0xff] %vm95_vm0, %v1692_v30 }
 0x952   :  { %2089 = shalt.err (!%p2086_p2)
}
 0x953   :  { %s2090_s25 = scalar_lea.hbm %s2445_s6, 256 }
 0x954   :  { %p2091_p3 = scmp.ne.s32.totalorder %s2445_s6, %s2090_s25  ;;  %p2094_p4 = scmp.lt.u32.totalorder %s2090_s25, %s2445_s6 }
 0x956   :  { %p2096_p5 = pnand %p2094_p4, %p2091_p3 }
 0x958   :  { %2099 = shalt.err (!%p2096_p5)
}
 0x959   :  { %1707 = dma.vmem_to_hbm [thread:$0]  %s1702_s12, 256, %s2445_s6, [#allocation4], %s2111_s20, %s2111_s20, %s2112_s21  }
 0x95a   :  { %2106 = dma.done.wait [#allocation4], 256  }
 0x95b   :  { %2107 = vsyncadd [#allocation4], 4294967040 }
 0x95c   :  { %1711 = vsyncpa [#allocation3], 1 }
 0x95d   :  { %1712 = vsyncpa [#allocation6], 1 }
 0x95e   :  { %1713 = vsyncpa [#allocation9], 1 }
 0x95f   :  { %1714 = vsyncpa [#allocation4], 1 }

</bundles_post_ra>
